<compile_context>
chip_gen: v5e
topology: v5e:2x2
jax: 0.10.0
libtpu: 0.0.40
codegen_flags: <defaults>
</compile_context>

<pallas_src>
import functools

import jax
import jax.numpy as jnp
from jax.experimental import pallas as pl
from jax.experimental.pallas import tpu as pltpu


def _round_up(x, m):
    return ((x + m - 1) // m) * m


# -----------------------------------------------------------------------------
# Kernel
# -----------------------------------------------------------------------------
def dueling_q_kernel(
    x_ref,
    w1_ref, b1_ref,
    w2_ref, b2_ref,
    w3_ref, b3_ref,
    wb_ref, bb_ref,    # fused branch first layer:  [h3, vh+ah], [1, vh+ah]
    wq_ref, bq_ref,    # block-diag second layer with dueling combine folded in: [vh+ah, A], [1, A]
    out_ref,
):
    f32 = jnp.float32
    bf16 = jnp.bfloat16

    x = x_ref[...].astype(bf16)

    # Main trunk: (Linear -> ReLU) x 3.  bf16 operands, f32 accumulation,
    # bias/ReLU in f32 (v5e VPU has no bf16 path).
    h = jnp.dot(x, w1_ref[...], preferred_element_type=f32) + b1_ref[...]
    h = jnp.maximum(h, 0.0).astype(bf16)
    h = jnp.dot(h, w2_ref[...], preferred_element_type=f32) + b2_ref[...]
    h = jnp.maximum(h, 0.0).astype(bf16)
    h = jnp.dot(h, w3_ref[...], preferred_element_type=f32) + b3_ref[...]
    h = jnp.maximum(h, 0.0).astype(bf16)

    # Fused value/advantage first layer: one matmul instead of two.
    hb = jnp.dot(h, wb_ref[...], preferred_element_type=f32) + bb_ref[...]
    hb = jnp.maximum(hb, 0.0).astype(bf16)

    # Second branch layer with the dueling combine (v + a - mean(a)) already
    # folded into the weights: epilogue is just matmul + bias + store.
    q = jnp.dot(hb, wq_ref[...], preferred_element_type=f32) + bq_ref[...]
    out_ref[...] = q.astype(out_ref.dtype)


# -----------------------------------------------------------------------------
# Parameter fusion (run once per parameter update, NOT per forward call)
# -----------------------------------------------------------------------------
def fuse_params(p):
    """Fuse the two branch heads into single matmuls and fold the dueling
    combine into the output weights.  Matmul weights -> bf16, biases -> f32."""
    bf16, f32 = jnp.bfloat16, jnp.float32
    vh = p["vw1"].shape[1]
    ah = p["aw1"].shape[1]
    A = p["aw2"].shape[1]

    # Branch first layers -> one [h3, vh+ah] matmul.
    wb = jnp.concatenate([p["vw1"], p["aw1"]], axis=1)
    bb = jnp.concatenate([p["vb1"], p["ab1"]], axis=1)

    # Branch second layers -> block-diagonal [vh+ah, 1+A], then fold the
    # dueling combine q = va @ C with C = [[1,...,1], [I_A - (1/A)*ones]].
    wo = jnp.zeros((vh + ah, 1 + A), f32)
    wo = wo.at[:vh, 0:1].set(p["vw2"].astype(f32))
    wo = wo.at[vh:, 1:].set(p["aw2"].astype(f32))
    bo = jnp.concatenate([p["vb2"], p["ab2"]], axis=1).astype(f32)

    comb = jnp.concatenate(
        [jnp.ones((1, A), f32), jnp.eye(A, dtype=f32) - 1.0 / A], axis=0)
    wq = wo @ comb            # [vh+ah, A]
    bq = bo @ comb            # [1, A]

    return (
        p["w1"].astype(bf16), p["b1"].astype(f32),
        p["w2"].astype(bf16), p["b2"].astype(f32),
        p["w3"].astype(bf16), p["b3"].astype(f32),
        wb.astype(bf16), bb.astype(f32),
        wq.astype(bf16), bq.astype(f32),
    )


# -----------------------------------------------------------------------------
# Tiling / wrapper
# -----------------------------------------------------------------------------
_MIN_TILE = 16          # bf16 sublane packing -> batch tiles in multiples of 16
_MEGACORE_MIN_B = 256   # only force >=2 grid steps (v7x megacore) above this


def _choose_tiling(B, tile_b):
    """Balanced batch tiles (multiples of 16) and an even number of >=2 grid
    steps when the batch is big enough to feed both v7x TensorCores."""
    n = max(pl.cdiv(B, max(int(tile_b), _MIN_TILE)), 1)
    if B >= _MEGACORE_MIN_B:
        if n < 2:
            n = 2
        if n % 2 == 1:
            n += 1
    tb = _round_up(pl.cdiv(B, n), _MIN_TILE)
    b_pad = _round_up(B, tb)
    return tb, b_pad, b_pad // tb


def _dueling_q_apply(x, fused, *, tile_b):
    """x: [B, state_size] float32; fused: tuple from fuse_params."""
    B, S = x.shape
    action_size = fused[-1].shape[1]

    tb, b_pad, n_steps = _choose_tiling(B, tile_b)
    if b_pad != B:
        x = jnp.pad(x, ((0, b_pad - B), (0, 0)))

    def resident(arr):
        # Whole array as one block, constant index_map (never re-DMA'd) and a
        # single pipeline buffer (no dead second buffer in VMEM).
        return pl.BlockSpec(arr.shape, lambda i: (0,) * arr.ndim,
                            pipeline_mode=pl.Buffered(1))

    in_specs = [pl.BlockSpec((tb, S), lambda i: (i, 0))] + [resident(a) for a in fused]
    # Narrow [tb, A] output on purpose: Q writeback bytes are negligible and
    # lane-padding would only add HBM traffic.
    out_specs = pl.BlockSpec((tb, action_size), lambda i: (i, 0))

    # Advisory cost estimate so XLA schedules surrounding ops around this
    # small kernel.
    dims = [S] + [w.shape[1] for w in fused[0::2]]
    flops = 2 * b_pad * sum(k * m for k, m in zip(dims[:-1], dims[1:]))
    weight_bytes = sum(a.size * a.dtype.itemsize for a in fused)
    bytes_accessed = (x.size * x.dtype.itemsize
                      + b_pad * action_size * 4
                      + weight_bytes)

    # Only raise the scoped-VMEM limit if the batch tile is pushed very large
    # (matters for v5e's 16 MiB scoped default); unnecessary at tb <= ~2K.
    est_vmem = (2 * tb * S * 4 + 2 * tb * action_size * 4
                + 8 * tb * 128 * 4 + 2 * weight_bytes)
    cp_kwargs = dict(dimension_semantics=("parallel",))
    if est_vmem > 12 * 1024 * 1024:
        cp_kwargs["vmem_limit_bytes"] = int(min(2 * est_vmem, 100 * 1024 * 1024))

    out = pl.pallas_call(
        dueling_q_kernel,
        out_shape=jax.ShapeDtypeStruct((b_pad, action_size), jnp.float32),
        grid=(n_steps,),
        in_specs=in_specs,
        out_specs=out_specs,
        compiler_params=pltpu.CompilerParams(**cp_kwargs),
        cost_estimate=pl.CostEstimate(
            flops=int(flops), transcendentals=0, bytes_accessed=int(bytes_accessed)),
    )(x, *fused)
    return out[:B]


def make_dueling_q_forward(params, *, tile_b=2048):
    """Fuse/cast the weights once (outside the hot path) and return a jitted
    forward that takes only x."""
    fused = fuse_params(params)

    def _fwd(x, fused_args):
        return _dueling_q_apply(x, fused_args, tile_b=tile_b)

    fwd_jit = jax.jit(_fwd)
    return lambda x: fwd_jit(x, fused)


# -----------------------------------------------------------------------------
# Init + references
# -----------------------------------------------------------------------------
def init_params(key, state_size, action_size, fc_units=128):
    """Deterministic init mimicking torch.nn.Linear default (uniform +-1/sqrt(fan_in)).
    Weights stored as [in, out] (transposed vs. torch)."""
    def linear(key, fan_in, fan_out):
        kw, kb = jax.random.split(key)
        bound = 1.0 / jnp.sqrt(jnp.asarray(fan_in, jnp.float32))
        w = jax.random.uniform(kw, (fan_in, fan_out), jnp.float32, -bound, bound)
        b = jax.random.uniform(kb, (1, fan_out), jnp.float32, -bound, bound)
        return w, b

    keys = jax.random.split(key, 7)
    h1, h2, h3 = fc_units, fc_units, fc_units // 2
    vh = fc_units // 4
    ah = fc_units // 2

    params = {}
    params["w1"], params["b1"] = linear(keys[0], state_size, h1)
    params["w2"], params["b2"] = linear(keys[1], h1, h2)
    params["w3"], params["b3"] = linear(keys[2], h2, h3)
    params["vw1"], params["vb1"] = linear(keys[3], h3, vh)
    params["vw2"], params["vb2"] = linear(keys[4], vh, 1)
    params["aw1"], params["ab1"] = linear(keys[5], h3, ah)
    params["aw2"], params["ab2"] = linear(keys[6], ah, action_size)
    return params


def reference_forward(x, p):
    """Pure-JAX f32 reference (matches the PyTorch module)."""
    h = jax.nn.relu(x @ p["w1"] + p["b1"])
    h = jax.nn.relu(h @ p["w2"] + p["b2"])
    h = jax.nn.relu(h @ p["w3"] + p["b3"])
    v = jax.nn.relu(h @ p["vw1"] + p["vb1"]) @ p["vw2"] + p["vb2"]
    a = jax.nn.relu(h @ p["aw1"] + p["ab1"]) @ p["aw2"] + p["ab2"]
    return v + a - a.mean(axis=1, keepdims=True)


def reference_forward_fused_bf16(x, fused):
    """Pure-JAX reference mirroring the kernel's fused bf16/f32 path exactly."""
    bf16, f32 = jnp.bfloat16, jnp.float32
    (w1, b1, w2, b2, w3, b3, wb, bb, wq, bq) = fused

    def mm(a, w):
        return jnp.dot(a.astype(bf16), w, preferred_element_type=f32)

    h = jax.nn.relu(mm(x, w1) + b1)
    h = jax.nn.relu(mm(h, w2) + b2)
    h = jax.nn.relu(mm(h, w3) + b3)
    hb = jax.nn.relu(mm(h, wb) + bb)
    return mm(hb, wq) + bq


# -----------------------------------------------------------------------------
if __name__ == "__main__":
    # Small shapes consistent with the module (Banana env: state=37, actions=4).
    batch = 8
    state_size = 37
    action_size = 4
    fc_units = 128

    key = jax.random.PRNGKey(0)
    kx, kp = jax.random.split(key)
    x = jax.random.normal(kx, (batch, state_size), jnp.float32)
    params = init_params(kp, state_size, action_size, fc_units)

    fwd = make_dueling_q_forward(params)
    q = jax.block_until_ready(fwd(x))
    assert q.shape == (batch, action_size)

    fused = fuse_params(params)
    q_ref_bf16 = reference_forward_fused_bf16(x, fused)
    q_ref_f32 = reference_forward(x, params)
    assert jnp.allclose(q, q_ref_bf16, atol=2e-2, rtol=2e-2), "mismatch vs fused bf16 reference"
    assert jnp.allclose(q, q_ref_f32, atol=6e-2, rtol=6e-2), "mismatch vs f32 reference"

    # Also exercise the multi-step (balanced-tile, >=2 grid steps) path with a
    # batch that is not a tile multiple.
    x_big = jax.random.normal(kx, (300, state_size), jnp.float32)
    q_big = jax.block_until_ready(fwd(x_big))
    assert q_big.shape == (300, action_size)
    assert jnp.allclose(q_big, reference_forward(x_big, params), atol=6e-2, rtol=6e-2), \
        "mismatch vs f32 reference (large batch)"

    print("KERNEL_OK")
</pallas_src>

<mosaic_0001>
module attributes {stable_mosaic.version = 11 : i64} {
  func.func @dueling_q_kernel(%arg0: i32, %arg1: memref<16x37xf32, #tpu.memory_space<vmem>>, %arg2: memref<37x128xbf16, #tpu.memory_space<vmem>>, %arg3: memref<1x128xf32, #tpu.memory_space<vmem>>, %arg4: memref<128x128xbf16, #tpu.memory_space<vmem>>, %arg5: memref<1x128xf32, #tpu.memory_space<vmem>>, %arg6: memref<128x64xbf16, #tpu.memory_space<vmem>>, %arg7: memref<1x64xf32, #tpu.memory_space<vmem>>, %arg8: memref<64x96xbf16, #tpu.memory_space<vmem>>, %arg9: memref<1x96xf32, #tpu.memory_space<vmem>>, %arg10: memref<96x4xbf16, #tpu.memory_space<vmem>>, %arg11: memref<1x4xf32, #tpu.memory_space<vmem>>, %arg12: memref<16x4xf32, #tpu.memory_space<vmem>>) attributes {dimension_semantics = [#tpu.dimension_semantics<parallel>], iteration_bounds = array<i64: 1>, scalar_prefetch = 0 : i64, scratch_operands = 0 : i64, tpu.core_type = #tpu.core_type<tc>, window_params = [{transform_indices = @transform_0, window_bounds = array<i64: 16, 37>}, {pipeline_mode = #tpu.pipeline_mode<synchronous>, transform_indices = @transform_1, window_bounds = array<i64: 37, 128>}, {pipeline_mode = #tpu.pipeline_mode<synchronous>, transform_indices = @transform_2, window_bounds = array<i64: 1, 128>}, {pipeline_mode = #tpu.pipeline_mode<synchronous>, transform_indices = @transform_3, window_bounds = array<i64: 128, 128>}, {pipeline_mode = #tpu.pipeline_mode<synchronous>, transform_indices = @transform_4, window_bounds = array<i64: 1, 128>}, {pipeline_mode = #tpu.pipeline_mode<synchronous>, transform_indices = @transform_5, window_bounds = array<i64: 128, 64>}, {pipeline_mode = #tpu.pipeline_mode<synchronous>, transform_indices = @transform_6, window_bounds = array<i64: 1, 64>}, {pipeline_mode = #tpu.pipeline_mode<synchronous>, transform_indices = @transform_7, window_bounds = array<i64: 64, 96>}, {pipeline_mode = #tpu.pipeline_mode<synchronous>, transform_indices = @transform_8, window_bounds = array<i64: 1, 96>}, {pipeline_mode = #tpu.pipeline_mode<synchronous>, transform_indices = @transform_9, window_bounds = array<i64: 96, 4>}, {pipeline_mode = #tpu.pipeline_mode<synchronous>, transform_indices = @transform_10, window_bounds = array<i64: 1, 4>}, {transform_indices = @transform_11, window_bounds = array<i64: 16, 4>}]} {
    %c0 = arith.constant 0 : index
    %c0_0 = arith.constant 0 : index
    %0 = vector.load %arg1[%c0, %c0_0] : memref<16x37xf32, #tpu.memory_space<vmem>>, vector<16x37xf32>
    %1 = arith.truncf %0 : vector<16x37xf32> to vector<16x37xbf16>
    %c0_1 = arith.constant 0 : index
    %c0_2 = arith.constant 0 : index
    %2 = vector.load %arg2[%c0_1, %c0_2] : memref<37x128xbf16, #tpu.memory_space<vmem>>, vector<37x128xbf16>
    %cst = arith.constant dense<0.000000e+00> : vector<16x128xf32>
    %3 = tpu.matmul %1, %2, %cst {dimension_numbers = #tpu.dot_dimension_numbers<[1], [0], [0], [1], [0, 0, 1, 1], [], []>} : vector<16x37xbf16>, vector<37x128xbf16>, vector<16x128xf32> -> vector<16x128xf32>
    %c0_3 = arith.constant 0 : index
    %c0_4 = arith.constant 0 : index
    %4 = vector.load %arg3[%c0_3, %c0_4] : memref<1x128xf32, #tpu.memory_space<vmem>>, vector<1x128xf32>
    %5 = vector.broadcast %4 : vector<1x128xf32> to vector<16x128xf32>
    %6 = arith.addf %3, %5 : vector<16x128xf32>
    %cst_5 = arith.constant 0.000000e+00 : f32
    %7 = vector.broadcast %cst_5 : f32 to vector<16x128xf32>
    %8 = arith.maximumf %6, %7 : vector<16x128xf32>
    %9 = arith.truncf %8 : vector<16x128xf32> to vector<16x128xbf16>
    %c0_6 = arith.constant 0 : index
    %c0_7 = arith.constant 0 : index
    %10 = vector.load %arg4[%c0_6, %c0_7] : memref<128x128xbf16, #tpu.memory_space<vmem>>, vector<128x128xbf16>
    %cst_8 = arith.constant dense<0.000000e+00> : vector<16x128xf32>
    %11 = tpu.matmul %9, %10, %cst_8 {dimension_numbers = #tpu.dot_dimension_numbers<[1], [0], [0], [1], [0, 0, 1, 1], [], []>} : vector<16x128xbf16>, vector<128x128xbf16>, vector<16x128xf32> -> vector<16x128xf32>
    %c0_9 = arith.constant 0 : index
    %c0_10 = arith.constant 0 : index
    %12 = vector.load %arg5[%c0_9, %c0_10] : memref<1x128xf32, #tpu.memory_space<vmem>>, vector<1x128xf32>
    %13 = vector.broadcast %12 : vector<1x128xf32> to vector<16x128xf32>
    %14 = arith.addf %11, %13 : vector<16x128xf32>
    %cst_11 = arith.constant 0.000000e+00 : f32
    %15 = vector.broadcast %cst_11 : f32 to vector<16x128xf32>
    %16 = arith.maximumf %14, %15 : vector<16x128xf32>
    %17 = arith.truncf %16 : vector<16x128xf32> to vector<16x128xbf16>
    %c0_12 = arith.constant 0 : index
    %c0_13 = arith.constant 0 : index
    %18 = vector.load %arg6[%c0_12, %c0_13] : memref<128x64xbf16, #tpu.memory_space<vmem>>, vector<128x64xbf16>
    %cst_14 = arith.constant dense<0.000000e+00> : vector<16x64xf32>
    %19 = tpu.matmul %17, %18, %cst_14 {dimension_numbers = #tpu.dot_dimension_numbers<[1], [0], [0], [1], [0, 0, 1, 1], [], []>} : vector<16x128xbf16>, vector<128x64xbf16>, vector<16x64xf32> -> vector<16x64xf32>
    %c0_15 = arith.constant 0 : index
    %c0_16 = arith.constant 0 : index
    %20 = vector.load %arg7[%c0_15, %c0_16] : memref<1x64xf32, #tpu.memory_space<vmem>>, vector<1x64xf32>
    %21 = vector.broadcast %20 : vector<1x64xf32> to vector<16x64xf32>
    %22 = arith.addf %19, %21 : vector<16x64xf32>
    %cst_17 = arith.constant 0.000000e+00 : f32
    %23 = vector.broadcast %cst_17 : f32 to vector<16x64xf32>
    %24 = arith.maximumf %22, %23 : vector<16x64xf32>
    %25 = arith.truncf %24 : vector<16x64xf32> to vector<16x64xbf16>
    %c0_18 = arith.constant 0 : index
    %c0_19 = arith.constant 0 : index
    %26 = vector.load %arg8[%c0_18, %c0_19] : memref<64x96xbf16, #tpu.memory_space<vmem>>, vector<64x96xbf16>
    %cst_20 = arith.constant dense<0.000000e+00> : vector<16x96xf32>
    %27 = tpu.matmul %25, %26, %cst_20 {dimension_numbers = #tpu.dot_dimension_numbers<[1], [0], [0], [1], [0, 0, 1, 1], [], []>} : vector<16x64xbf16>, vector<64x96xbf16>, vector<16x96xf32> -> vector<16x96xf32>
    %c0_21 = arith.constant 0 : index
    %c0_22 = arith.constant 0 : index
    %28 = vector.load %arg9[%c0_21, %c0_22] : memref<1x96xf32, #tpu.memory_space<vmem>>, vector<1x96xf32>
    %29 = vector.broadcast %28 : vector<1x96xf32> to vector<16x96xf32>
    %30 = arith.addf %27, %29 : vector<16x96xf32>
    %cst_23 = arith.constant 0.000000e+00 : f32
    %31 = vector.broadcast %cst_23 : f32 to vector<16x96xf32>
    %32 = arith.maximumf %30, %31 : vector<16x96xf32>
    %33 = arith.truncf %32 : vector<16x96xf32> to vector<16x96xbf16>
    %c0_24 = arith.constant 0 : index
    %c0_25 = arith.constant 0 : index
    %34 = vector.load %arg10[%c0_24, %c0_25] : memref<96x4xbf16, #tpu.memory_space<vmem>>, vector<96x4xbf16>
    %cst_26 = arith.constant dense<0.000000e+00> : vector<16x4xf32>
    %35 = tpu.matmul %33, %34, %cst_26 {dimension_numbers = #tpu.dot_dimension_numbers<[1], [0], [0], [1], [0, 0, 1, 1], [], []>} : vector<16x96xbf16>, vector<96x4xbf16>, vector<16x4xf32> -> vector<16x4xf32>
    %c0_27 = arith.constant 0 : index
    %c0_28 = arith.constant 0 : index
    %36 = vector.load %arg11[%c0_27, %c0_28] : memref<1x4xf32, #tpu.memory_space<vmem>>, vector<1x4xf32>
    %37 = vector.broadcast %36 : vector<1x4xf32> to vector<16x4xf32>
    %38 = arith.addf %35, %37 : vector<16x4xf32>
    %c0_29 = arith.constant 0 : index
    %c0_30 = arith.constant 0 : index
    %39 = vector.load %arg12[%c0_29, %c0_30] : memref<16x4xf32, #tpu.memory_space<vmem>>, vector<16x4xf32>
    tpu.vector_store %arg12[%c0_29, %c0_30], %38 {strides = array<i32>} : memref<16x4xf32, #tpu.memory_space<vmem>>, vector<16x4xf32>,
    return
  }
  func.func @transform_0(%arg0: i32) -> (i32, i32) {
    %c0_i32 = arith.constant 0 : i32
    %c0_i32_0 = arith.constant 0 : i32
    return %arg0, %c0_i32 : i32, i32
  }
  func.func @transform_1(%arg0: i32) -> (i32, i32) {
    %c0_i32 = arith.constant 0 : i32
    %c0_i32_0 = arith.constant 0 : i32
    %c0_i32_1 = arith.constant 0 : i32
    return %c0_i32, %c0_i32_0 : i32, i32
  }
  func.func @transform_2(%arg0: i32) -> (i32, i32) {
    %c0_i32 = arith.constant 0 : i32
    %c0_i32_0 = arith.constant 0 : i32
    %c0_i32_1 = arith.constant 0 : i32
    return %c0_i32, %c0_i32_0 : i32, i32
  }
  func.func @transform_3(%arg0: i32) -> (i32, i32) {
    %c0_i32 = arith.constant 0 : i32
    %c0_i32_0 = arith.constant 0 : i32
    %c0_i32_1 = arith.constant 0 : i32
    return %c0_i32, %c0_i32_0 : i32, i32
  }
  func.func @transform_4(%arg0: i32) -> (i32, i32) {
    %c0_i32 = arith.constant 0 : i32
    %c0_i32_0 = arith.constant 0 : i32
    %c0_i32_1 = arith.constant 0 : i32
    return %c0_i32, %c0_i32_0 : i32, i32
  }
  func.func @transform_5(%arg0: i32) -> (i32, i32) {
    %c0_i32 = arith.constant 0 : i32
    %c0_i32_0 = arith.constant 0 : i32
    %c0_i32_1 = arith.constant 0 : i32
    return %c0_i32, %c0_i32_0 : i32, i32
  }
  func.func @transform_6(%arg0: i32) -> (i32, i32) {
    %c0_i32 = arith.constant 0 : i32
    %c0_i32_0 = arith.constant 0 : i32
    %c0_i32_1 = arith.constant 0 : i32
    return %c0_i32, %c0_i32_0 : i32, i32
  }
  func.func @transform_7(%arg0: i32) -> (i32, i32) {
    %c0_i32 = arith.constant 0 : i32
    %c0_i32_0 = arith.constant 0 : i32
    %c0_i32_1 = arith.constant 0 : i32
    return %c0_i32, %c0_i32_0 : i32, i32
  }
  func.func @transform_8(%arg0: i32) -> (i32, i32) {
    %c0_i32 = arith.constant 0 : i32
    %c0_i32_0 = arith.constant 0 : i32
    %c0_i32_1 = arith.constant 0 : i32
    return %c0_i32, %c0_i32_0 : i32, i32
  }
  func.func @transform_9(%arg0: i32) -> (i32, i32) {
    %c0_i32 = arith.constant 0 : i32
    %c0_i32_0 = arith.constant 0 : i32
    %c0_i32_1 = arith.constant 0 : i32
    return %c0_i32, %c0_i32_0 : i32, i32
  }
  func.func @transform_10(%arg0: i32) -> (i32, i32) {
    %c0_i32 = arith.constant 0 : i32
    %c0_i32_0 = arith.constant 0 : i32
    %c0_i32_1 = arith.constant 0 : i32
    return %c0_i32, %c0_i32_0 : i32, i32
  }
  func.func @transform_11(%arg0: i32) -> (i32, i32) {
    %c0_i32 = arith.constant 0 : i32
    %c0_i32_0 = arith.constant 0 : i32
    return %arg0, %c0_i32 : i32, i32
  }
}

</mosaic_0001>

<bundles_post_ra>
// kernel: _fwd.1
= control target key start
LH: loop header
LB: loop body
LE: loop exit
PB: predicated region body
PF: predicated region fallthrough
CT: control target
= control target key end

     0   :  { %vm70_vm0 = vcmask 1041408   ;;  %vm71_vm1 = vcmask 1042432   ;;  %v547_v1 = vmov 65535   ;;  %vm66_vm2 = vcmask 302080   ;;  %s722_s1 = inlined_call_operand.vmem [shape: bf16[37,128], index: 1, kind: input, shape index: {}]   ;;  %s723_s3 = inlined_call_operand.vmem [shape: bf16[128,128], index: 3, kind: input, shape index: {}]   ;;  %s724_s2 = inlined_call_operand.vmem [shape: f32[1,128], index: 2, kind: input, shape index: {}]   ;;  %s725_s0 = inlined_call_operand.vmem [shape: f32[16,37], index: 0, kind: input, shape index: {}]   ;;  %s726_s4 = inlined_call_operand.vmem [shape: f32[1,128], index: 4, kind: input, shape index: {}]   ;;  %s727_s5 = inlined_call_operand.vmem [shape: bf16[128,64], index: 5, kind: input, shape index: {}]   ;;  %s728_s6 = inlined_call_operand.vmem [shape: f32[1,64], index: 6, kind: input, shape index: {}]   ;;  %s729_s7 = inlined_call_operand.vmem [shape: bf16[64,96], index: 7, kind: input, shape index: {}]   ;;  %s730_s8 = inlined_call_operand.vmem [shape: f32[1,96], index: 8, kind: input, shape index: {}]   ;;  %s731_s9 = inlined_call_operand.vmem [shape: bf16[96,4], index: 9, kind: input, shape index: {}]   ;;  %s732_s10 = inlined_call_operand.vmem [shape: f32[1,4], index: 10, kind: input, shape index: {}]   ;;  %s733_s11 = inlined_call_operand.vmem [shape: f32[16,4], index: 11, kind: output, shape index: {}]  }
   0x1   :  { %v46_v0 = vld [vmem:[%s722_s1 + $0x10] sm:$0x7]  ;;  %v72_v2 = vsel %vm70_vm0, 4294967295, %v547_v1  ;;  %v522_v4 = vld [vmem:[%s723_s3 + $0x38] sm:$0xff]  ;;  %v514_v9 = vld [vmem:[%s722_s1 + $0x8] sm:$0xff]  ;;  %vm300_vm3 = vcmask 523264  }
   0x2   :  { %v60_v3 = vunpack.c.l.b16 %v46_v0  ;;  %v73_v5 = vsel %vm71_vm1, %v72_v2, 0  ;;  %162 = vmatpush.bf16.msra.mxu1 %v522_v4  ;;  %v521_v7 = vld [vmem:[%s723_s3 + $0x30] sm:$0xff]  ;;  %v520_v10 = vld [vmem:[%s723_s3 + $0x28] sm:$0xff]  ;;  %v513_v11 = vld [vmem:[%s722_s1] sm:$0xff]  ;;  %vm373_vm4 = vcmask 785408   ;;  %vm391_vm5 = vcmask 31744  }
   0x3   :  { %v39_v12 = vld [vmem:[%s725_s0] sm:$0xff]  ;;  %v40_v13 = vld [vmem:[%s725_s0 + $0x8] sm:$0xff]  ;;  %v518_v16 = vld [vmem:[%s723_s3 + $0x18] sm:$0xff] }
   0x4   :  { %v63_v6 = vpack.c.b16 %v60_v3, %v60_v3  ;;  %v519_v14 = vld [vmem:[%s723_s3 + $0x20] sm:$0xff]  ;;  %v41_v15 = vpack.c.bf16 %v40_v13, %v39_v12  ;;  %v517_v17 = vld [vmem:[%s723_s3 + $0x10] sm:$0xff]  ;;  %v516_v18 = vld [vmem:[%s723_s3 + $0x8] sm:$0xff] }
   0x5   :  { %v515_v19 = vld [vmem:[%s723_s3] sm:$0xff]  ;;  %v530_v20 = vld [vmem:[%s727_s5 + $0x38] sm:$0xff]  ;;  %v529_v21 = vld [vmem:[%s727_s5 + $0x30] sm:$0xff] }
   0x6   :  { %v75_v8 = vand.u32 %v73_v5, %v63_v6  ;;  %163 = vmatpush.bf16.msra.mxu1 %v521_v7  ;;  %247 = vmatpush.bf16.msra.mxu2 %v530_v20  ;;  %v528_v22 = vld [vmem:[%s727_s5 + $0x28] sm:$0xff]  ;;  %v527_v23 = vld [vmem:[%s727_s5 + $0x20] sm:$0xff]  ;;  %v526_v32 = vld [vmem:[%s727_s5 + $0x18] sm:$0xff] }
   0x7   :  { %v542_v25 = vld [vmem:[%s724_s2] ss:$0 sm:$0xff]  ;;  %v525_v33 = vld [vmem:[%s727_s5 + $0x10] sm:$0xff]  ;;  %v524_v34 = vld [vmem:[%s727_s5 + $0x8] sm:$0xff] }
   0x8   :  { %82 = vmatpush.bf16.msra.mxu3 %v75_v8  ;;  %v523_v35 = vld [vmem:[%s727_s5] sm:$0xff]  ;;  %v534_v36 = vld [vmem:[%s729_s7 + $0x18] sm:$0xff]  ;;  %v533_v45 = vld [vmem:[%s729_s7 + $0x10] sm:$0xff] }
   0x9   :  { %v543_v38 = vld [vmem:[%s726_s4] ss:$0 sm:$0xff]  ;;  %v532_v46 = vld [vmem:[%s729_s7 + $0x8] sm:$0xff]  ;;  %v538_v58 = vld [vmem:[%s731_s9 + $0x18] sm:$0xff] }
   0xa   :  { %164 = vmatpush.bf16.msra.mxu1 %v520_v10  ;;  %248 = vmatpush.bf16.msra.mxu2 %v529_v21  ;;  %v531_v47 = vld [vmem:[%s729_s7] sm:$0xff]  ;;  %v540_v48 = vld [vmem:[%s731_s9 + $0x28] sm:$0xff]  ;;  %v537_v59 = vld [vmem:[%s731_s9 + $0x10] sm:$0xff] }
   0xb   :  { %379 = vmatpush.bf16.msra.mxu0 %v540_v48  ;;  %v539_v49 = vld [vmem:[%s731_s9 + $0x20] sm:$0xff]  ;;  %v536_v60 = vld [vmem:[%s731_s9 + $0x8] sm:$0xff] }
   0xc   :  { %83 = vmatpush.bf16.msra.mxu3 %v514_v9  ;;  %v544_v51 = vld [vmem:[%s728_s6] ss:$0 sm:$0xff] }
   0xd   :  { %v535_v61 = vld [vmem:[%s731_s9] sm:$0xff] }
   0xe   :  { %165 = vmatpush.bf16.msra.mxu1 %v519_v14  ;;  %249 = vmatpush.bf16.msra.mxu2 %v528_v22  ;;  %v545_v63 = vld [vmem:[%s730_s8] ss:$0 sm:$0xff] }
   0xf   :  { %380 = vmatpush.bf16.msra.mxu0 %v539_v49  ;;  %v546_v6 = vld [vmem:[%s732_s10] ss:$0 sm:$0xff] }
  0x10   :  { %84 = vmatpush.bf16.msra.mxu3 %v513_v11 }
  0x12   :  { %166 = vmatpush.bf16.msra.mxu1 %v518_v16  ;;  %250 = vmatpush.bf16.msra.mxu2 %v527_v23 }
  0x13   :  { %406 = vmatmul.msk.bf16.vlgmr.msra.gmra.mxu3 %vm66_vm2, %v41_v15  ;;  %381 = vmatpush.bf16.msra.mxu0 %v538_v58 }
  0x14   :  { %308 = vmatpush.bf16.msrb.mxu3 %v534_v36 }
  0x16   :  { %167 = vmatpush.bf16.msra.mxu1 %v517_v17  ;;  %251 = vmatpush.bf16.msra.mxu2 %v526_v32 }
  0x17   :  { %382 = vmatpush.bf16.msra.mxu0 %v537_v59 }
  0x18   :  { %309 = vmatpush.bf16.msrb.mxu3 %v533_v45 }
  0x1a   :  { %168 = vmatpush.bf16.msra.mxu1 %v516_v18  ;;  %252 = vmatpush.bf16.msra.mxu2 %v525_v33 }
  0x1b   :  { %383 = vmatpush.bf16.msra.mxu0 %v536_v60 }
  0x1c   :  { %310 = vmatpush.bf16.msrb.mxu3 %v532_v46 }
  0x1e   :  { %169 = vmatpush.bf16.msra.mxu1 %v515_v19  ;;  %253 = vmatpush.bf16.msra.mxu2 %v524_v34 }
  0x1f   :  { %384 = vmatpush.bf16.msra.mxu0 %v535_v61 }
  0x20   :  { %311 = vmatpush.bf16.msrb.mxu3 %v531_v47 }
  0x22   :  { %254 = vmatpush.bf16.msra.mxu2 %v523_v35 }
  0x96   :  { %v86_v24 = vpop.f32.mrf.mxu3 }
  0x97   :  { %v87_v26 = vadd.f32 %v542_v25, %v86_v24 }
  0x99   :  { %v91_v29 = vmax.f32 %v87_v26, 0.0 }
  0x9e   :  { %v88_v27 = vpop.f32.mrf.mxu3 }
  0x9f   :  { %v89_v28 = vadd.f32 %v542_v25, %v88_v27 }
  0xa1   :  { %v92_v30 = vmax.f32 %v89_v28, 0.0 }
  0xa3   :  { %v93_v31 = vpack.c.bf16 %v92_v30, %v91_v29 }
  0xa5   :  { %170 = vmatmul.bf16.vlgmr.msra.gmra.mxu1 %v93_v31 }
 0x122   :  { %v171_v37 = vpop.f32.mrf.mxu1 }
 0x123   :  { %v172_v39 = vadd.f32 %v543_v38, %v171_v37 }
 0x125   :  { %v176_v42 = vmax.f32 %v172_v39, 0.0 }
 0x12a   :  { %v173_v40 = vpop.f32.mrf.mxu1 }
 0x12b   :  { %v174_v41 = vadd.f32 %v543_v38, %v173_v40 }
 0x12d   :  { %v177_v43 = vmax.f32 %v174_v41, 0.0 }
 0x12f   :  { %v178_v44 = vpack.c.bf16 %v177_v43, %v176_v42 }
 0x131   :  { %255 = vmatmul.bf16.vlgmr.msra.gmra.mxu2 %v178_v44 }
 0x1b4   :  { %v256_v50 = vpop.f32.mrf.mxu2 }
 0x1b5   :  { %v257_v52 = vadd.f32 %v544_v51, %v256_v50 }
 0x1b7   :  { %v261_v55 = vmax.f32 %v257_v52, 0.0 }
 0x1bc   :  { %v258_v53 = vpop.f32.mrf.mxu2 }
 0x1bd   :  { %v259_v54 = vadd.f32 %v544_v51, %v258_v53 }
 0x1bf   :  { %v262_v56 = vmax.f32 %v259_v54, 0.0 }
 0x1c1   :  { %v263_v57 = vpack.c.bf16 %v262_v56, %v261_v55 }
 0x1c3   :  { %487 = vmatmul.msk.bf16.vlgmr.msrb.gmra.mxu3 %vm300_vm3, %v263_v57 }
 0x246   :  { %v313_v62 = vpop.f32.mrf.mxu3 }
 0x247   :  { %v314_v0 = vadd.f32 %v545_v63, %v313_v62 }
 0x249   :  { %v318_v3 = vmax.f32 %v314_v0, 0.0 }
 0x24e   :  { %v315_v1 = vpop.f32.mrf.mxu3 }
 0x24f   :  { %v316_v2 = vadd.f32 %v545_v63, %v315_v1 }
 0x251   :  { %v319_v4 = vmax.f32 %v316_v2, 0.0 }
 0x253   :  { %v320_v5 = vpack.c.bf16 %v319_v4, %v318_v3 }
 0x255   :  { %512 = vmatmul.msk.bf16.vlgmr.msra.gmra.mxu0 %vm373_vm4, %v320_v5 }
 0x2d2   :  { %v386_v7 = vpop.f32.mrf.mxu0 }
 0x2d3   :  { %v387_v8 = vadd.f32 %v546_v6, %v386_v7 }
 0x2d5   :  { %392 = vst.msk [vmem:[%s733_s11] sm:$0xff] %vm391_vm5, %v387_v8 }
 0x2da   :  { %v388_v9 = vpop.f32.mrf.mxu0 }
 0x2db   :  { %v389_v10 = vadd.f32 %v546_v6, %v388_v9 }
 0x2dd   :  { %393 = vst.msk [vmem:[%s733_s11 + $0x8] sm:$0xff] %vm391_vm5, %v389_v10 }

</bundles_post_ra>
